<compile_context>
chip_gen: v7x
topology: tpu7x:2x2x1
jax: 0.10.0
libtpu: 0.0.40
codegen_flags: <defaults>
</compile_context>

<pallas_src>
import functools

import jax
import jax.numpy as jnp
from jax.experimental import pallas as pl
from jax.experimental.pallas import tpu as pltpu

_LANE = 128
_SUBLANE = 8


def _round_up(n, m):
    return ((n + m - 1) // m) * m


def _make_kernel(TC, T):
    """Kernel over grid=(ceil(T/TC),); each grid step runs TC timesteps."""
    guard = (T % TC) != 0   # only needed when the last chunk is partial

    def kernel(pre_ref, h0_ref, wh_ref, mask_ref, out_ref, hT_ref):
        c = pl.program_id(0)

        @pl.when(c == 0)
        def _init():
            hT_ref[...] = h0_ref[...]

        wh = wh_ref[...]        # (NPAD, NPAD), VMEM-resident recurrent weight
        mask = mask_ref[...]    # (BPAD, NPAD): 0 on logit columns, -inf elsewhere

        def step(tc, h):
            # Serial part of the step: one MXU matmul against the recurrent weight.
            fused = pre_ref[tc] + jnp.dot(h, wh, preferred_element_type=jnp.float32)

            # LogSoftmax over the logit head [H, H+O) via the precomputed additive mask.
            masked = fused + mask
            m = jnp.max(masked, axis=1, keepdims=True)
            shifted = masked - m
            lse = jnp.log(jnp.sum(jnp.exp(shifted), axis=1, keepdims=True))
            out_ref[tc] = (shifted - lse).astype(out_ref.dtype)

            if guard:
                # Don't advance the hidden state past the true sequence length.
                t_global = c * TC + tc
                return jnp.where(t_global < T, fused, h)
            return fused

        # hT_ref doubles as the cross-chunk hidden carry (constant-index output block).
        h_final = jax.lax.fori_loop(0, TC, step, hT_ref[...], unroll=True)
        hT_ref[...] = h_final

    return kernel


def rnn_sequence_forward(x_seq, h0, w_i2h, b_i2h, w_i2o, b_i2o, *, time_chunk=8):
    """Run the RNN cell over a whole sequence with one Pallas kernel.

    x_seq : (T, B, input_size)
    h0    : (B, H)
    w_i2h : (input_size + H, H)   (transposed vs torch nn.Linear.weight)
    w_i2o : (input_size + H, O)
    Returns (log_probs (T, B, O), final_hidden (B, H)).
    """
    T, B, IN = x_seq.shape
    H = w_i2h.shape[1]
    O = w_i2o.shape[1]
    NPAD = _round_up(H + O, _LANE)
    BPAD = _round_up(B, _SUBLANE)
    TC = max(1, min(int(time_chunk), T))
    TPAD = _round_up(T, TC)
    num_chunks = TPAD // TC
    f32 = jnp.float32

    # --- one-time layout plumbing / hoisted work (outside the kernel) ---
    # Fused-head weights: cols [0,H) = i2h, [H,H+O) = i2o; W_h rows >= H are zero.
    w_x = jnp.zeros((IN, NPAD), f32)
    w_x = w_x.at[:, :H].set(w_i2h[:IN].astype(f32))
    w_x = w_x.at[:, H:H + O].set(w_i2o[:IN].astype(f32))

    w_h = jnp.zeros((NPAD, NPAD), f32)
    w_h = w_h.at[:H, :H].set(w_i2h[IN:].astype(f32))
    w_h = w_h.at[:H, H:H + O].set(w_i2o[IN:].astype(f32))

    b = jnp.zeros((NPAD,), f32).at[:H].set(b_i2h.astype(f32)).at[H:H + O].set(b_i2o.astype(f32))

    # Hoisted input projection: no sequential dependence, so do it as ONE big matmul
    # here (T*BPAD rows of MXU work) instead of per-step inside the serial recurrence.
    x_pad = jnp.zeros((TPAD, BPAD, IN), f32).at[:T, :B, :].set(x_seq.astype(f32))
    pre = jnp.einsum("tbi,in->tbn", x_pad, w_x) + b          # (TPAD, BPAD, NPAD)

    h0_pad = jnp.zeros((BPAD, NPAD), f32).at[:B, :H].set(h0.astype(f32))

    # Additive log-softmax mask (precomputed; replaces per-step iota/compare/where).
    col = jax.lax.broadcasted_iota(jnp.int32, (BPAD, NPAD), 1)
    mask = jnp.where((col >= H) & (col < H + O), 0.0, -jnp.inf).astype(f32)

    kernel = _make_kernel(TC, T)

    flops = TPAD * (2 * BPAD * NPAD * NPAD + 5 * BPAD * NPAD)
    transcendentals = TPAD * BPAD * (NPAD + 1)
    bytes_accessed = 4 * (2 * TPAD * BPAD * NPAD + NPAD * NPAD + 3 * BPAD * NPAD)

    out_slab, hT_slab = pl.pallas_call(
        kernel,
        out_shape=(
            jax.ShapeDtypeStruct((TPAD, BPAD, NPAD), f32),   # per-step log-softmax slab
            jax.ShapeDtypeStruct((BPAD, NPAD), f32),         # final fused row (hidden in [:H])
        ),
        grid_spec=pltpu.PrefetchScalarGridSpec(
            num_scalar_prefetch=0,
            grid=(num_chunks,),
            in_specs=[
                pl.BlockSpec((TC, BPAD, NPAD), lambda c: (c, 0, 0)),  # pre: streams per chunk
                pl.BlockSpec((BPAD, NPAD), lambda c: (0, 0)),         # h0  : VMEM-resident
                pl.BlockSpec((NPAD, NPAD), lambda c: (0, 0)),         # W_h : VMEM-resident
                pl.BlockSpec((BPAD, NPAD), lambda c: (0, 0)),         # mask: VMEM-resident
            ],
            out_specs=[
                pl.BlockSpec((TC, BPAD, NPAD), lambda c: (c, 0, 0)),
                pl.BlockSpec((BPAD, NPAD), lambda c: (0, 0)),         # doubles as hidden carry
            ],
        ),
        compiler_params=pltpu.CompilerParams(
            dimension_semantics=("arbitrary",),      # recurrence: time axis is sequential
            vmem_limit_bytes=32 * 1024 * 1024,
        ),
        cost_estimate=pl.CostEstimate(
            flops=flops,
            transcendentals=transcendentals,
            bytes_accessed=bytes_accessed,
        ),
    )(pre, h0_pad, w_h, mask)

    log_probs = out_slab[:T, :B, H:H + O]
    new_hidden = hT_slab[:B, :H]
    return log_probs, new_hidden


def rnn_forward(x, hidden, w_i2h, b_i2h, w_i2o, b_i2o):
    """Single cell step — exact equivalent of RNN.forward(input, hidden)."""
    log_probs, new_hidden = rnn_sequence_forward(x[None], hidden,
                                                 w_i2h, b_i2h, w_i2o, b_i2o)
    return log_probs[0], new_hidden


def init_params(key, input_size, hidden_size, output_size):
    # Deterministic init mimicking nn.Linear's uniform(-1/sqrt(fan_in), 1/sqrt(fan_in)).
    k1, k2, k3, k4 = jax.random.split(key, 4)
    fan_in = input_size + hidden_size
    bound = 1.0 / float(jnp.sqrt(jnp.float32(fan_in)))
    w_i2h = jax.random.uniform(k1, (fan_in, hidden_size), jnp.float32, -bound, bound)
    b_i2h = jax.random.uniform(k2, (hidden_size,), jnp.float32, -bound, bound)
    w_i2o = jax.random.uniform(k3, (fan_in, output_size), jnp.float32, -bound, bound)
    b_i2o = jax.random.uniform(k4, (output_size,), jnp.float32, -bound, bound)
    return w_i2h, b_i2h, w_i2o, b_i2o


if __name__ == "__main__":
    input_size, hidden_size, output_size = 16, 32, 8
    batch, seq_len = 2, 8

    key = jax.random.PRNGKey(0)
    k_x, k_p = jax.random.split(key)
    x_seq = jax.random.normal(k_x, (seq_len, batch, input_size), jnp.float32)
    hidden0 = jnp.zeros((batch, hidden_size), jnp.float32)          # initHidden()
    w_i2h, b_i2h, w_i2o, b_i2o = init_params(k_p, input_size, hidden_size, output_size)

    # Pure-JAX reference: roll the original torch cell over the sequence.
    h = hidden0
    ref_outs = []
    for t in range(seq_len):
        combined = jnp.concatenate([x_seq[t], h], axis=1)
        h = combined @ w_i2h + b_i2h
        logits = combined @ w_i2o + b_i2o
        ref_outs.append(jax.nn.log_softmax(logits, axis=1))
    ref_out = jnp.stack(ref_outs)

    # Full sequence in one chunk (T == TC == 8).
    seq_fn = jax.jit(rnn_sequence_forward)
    log_probs, hT = seq_fn(x_seq, hidden0, w_i2h, b_i2h, w_i2o, b_i2o)
    jax.block_until_ready((log_probs, hT))
    assert log_probs.shape == (seq_len, batch, output_size)
    assert hT.shape == (batch, hidden_size)
    assert jnp.allclose(log_probs, ref_out, atol=1e-4), float(jnp.max(jnp.abs(log_probs - ref_out)))
    assert jnp.allclose(hT, h, atol=1e-4), float(jnp.max(jnp.abs(hT - h)))

    # Multi-chunk path with a partial last chunk (exercises the carry + length guard).
    seq_fn_tc3 = jax.jit(functools.partial(rnn_sequence_forward, time_chunk=3))
    log_probs3, hT3 = seq_fn_tc3(x_seq, hidden0, w_i2h, b_i2h, w_i2o, b_i2o)
    jax.block_until_ready((log_probs3, hT3))
    assert jnp.allclose(log_probs3, ref_out, atol=1e-4)
    assert jnp.allclose(hT3, h, atol=1e-4)

    # Single-step path (exact module forward signature).
    step_out, step_h = rnn_forward(x_seq[0], hidden0, w_i2h, b_i2h, w_i2o, b_i2o)
    jax.block_until_ready((step_out, step_h))
    assert jnp.allclose(step_out, ref_out[0], atol=1e-4)

    print("KERNEL_OK")
</pallas_src>

<mosaic_0001>
module attributes {stable_mosaic.version = 11 : i64} {
  func.func @kernel(%arg0: i32, %arg1: memref<8x8x128xf32, #tpu.memory_space<vmem>>, %arg2: memref<8x128xf32, #tpu.memory_space<vmem>>, %arg3: memref<128x128xf32, #tpu.memory_space<vmem>>, %arg4: memref<8x128xf32, #tpu.memory_space<vmem>>, %arg5: memref<8x8x128xf32, #tpu.memory_space<vmem>>, %arg6: memref<8x128xf32, #tpu.memory_space<vmem>>) attributes {dimension_semantics = [#tpu.dimension_semantics<arbitrary>], iteration_bounds = array<i64: 1>, scalar_prefetch = 0 : i64, scratch_operands = 0 : i64, tpu.core_type = #tpu.core_type<tc>, window_params = [{transform_indices = @transform_0, window_bounds = array<i64: 8, 8, 128>}, {pipeline_mode = #tpu.pipeline_mode<synchronous>, transform_indices = @transform_1, window_bounds = array<i64: 8, 128>}, {pipeline_mode = #tpu.pipeline_mode<synchronous>, transform_indices = @transform_2, window_bounds = array<i64: 128, 128>}, {pipeline_mode = #tpu.pipeline_mode<synchronous>, transform_indices = @transform_3, window_bounds = array<i64: 8, 128>}, {transform_indices = @transform_4, window_bounds = array<i64: 8, 8, 128>}, {pipeline_mode = #tpu.pipeline_mode<synchronous>, transform_indices = @transform_5, window_bounds = array<i64: 8, 128>}]} {
    %c0_i32 = arith.constant 0 : i32
    %0 = arith.cmpi eq, %arg0, %c0_i32 : i32
    %1 = arith.extui %0 : i1 to i32
    %c0_i32_0 = arith.constant 0 : i32
    %2 = arith.cmpi ne, %1, %c0_i32_0 : i32
    scf.if %2 {
      %c0_64 = arith.constant 0 : index
      %c0_65 = arith.constant 0 : index
      %167 = vector.load %arg2[%c0_64, %c0_65] : memref<8x128xf32, #tpu.memory_space<vmem>>, vector<8x128xf32>
      %c0_66 = arith.constant 0 : index
      %c0_67 = arith.constant 0 : index
      %168 = vector.load %arg6[%c0_66, %c0_67] : memref<8x128xf32, #tpu.memory_space<vmem>>, vector<8x128xf32>
      tpu.vector_store %arg6[%c0_66, %c0_67], %167 {strides = array<i32>} : memref<8x128xf32, #tpu.memory_space<vmem>>, vector<8x128xf32>,
    } else {
    }
    %c0 = arith.constant 0 : index
    %c0_1 = arith.constant 0 : index
    %3 = vector.load %arg3[%c0, %c0_1] : memref<128x128xf32, #tpu.memory_space<vmem>>, vector<128x128xf32>
    %c0_2 = arith.constant 0 : index
    %c0_3 = arith.constant 0 : index
    %4 = vector.load %arg4[%c0_2, %c0_3] : memref<8x128xf32, #tpu.memory_space<vmem>>, vector<8x128xf32>
    %c0_4 = arith.constant 0 : index
    %c0_5 = arith.constant 0 : index
    %5 = vector.load %arg6[%c0_4, %c0_5] : memref<8x128xf32, #tpu.memory_space<vmem>>, vector<8x128xf32>
    %c0_i32_6 = arith.constant 0 : i32
    %6 = arith.index_cast %c0_i32_6 : i32 to index
    %c0_7 = arith.constant 0 : index
    %c0_8 = arith.constant 0 : index
    %7 = vector.load %arg1[%6, %c0_7, %c0_8] : memref<8x8x128xf32, #tpu.memory_space<vmem>>, vector<1x8x128xf32>
    %8 = vector.shape_cast %7 : vector<1x8x128xf32> to vector<8x128xf32>
    %cst = arith.constant dense<0.000000e+00> : vector<8x128xf32>
    %9 = tpu.matmul %5, %3, %cst {dimension_numbers = #tpu.dot_dimension_numbers<[1], [0], [0], [1], [0, 0, 1, 1], [], []>} : vector<8x128xf32>, vector<128x128xf32>, vector<8x128xf32> -> vector<8x128xf32>
    %10 = arith.addf %8, %9 : vector<8x128xf32>
    %11 = arith.addf %10, %4 : vector<8x128xf32>
    %cst_9 = arith.constant dense<0xFF800000> : vector<8xf32>
    %12 = vector.multi_reduction <maximumf>, %11, %cst_9 [1] : vector<8x128xf32> to vector<8xf32>
    %13 = vector.shape_cast %12 : vector<8xf32> to vector<8x1xf32>
    %14 = vector.broadcast %13 : vector<8x1xf32> to vector<8x128xf32>
    %15 = arith.subf %11, %14 : vector<8x128xf32>
    %16 = math.exp %15 : vector<8x128xf32>
    %cst_10 = arith.constant dense<0.000000e+00> : vector<8xf32>
    %17 = vector.multi_reduction <add>, %16, %cst_10 [1] : vector<8x128xf32> to vector<8xf32>
    %18 = vector.shape_cast %17 : vector<8xf32> to vector<8x1xf32>
    %19 = math.log %18 : vector<8x1xf32>
    %20 = vector.broadcast %19 : vector<8x1xf32> to vector<8x128xf32>
    %21 = arith.subf %15, %20 : vector<8x128xf32>
    %22 = arith.index_cast %c0_i32_6 : i32 to index
    %c0_11 = arith.constant 0 : index
    %c0_12 = arith.constant 0 : index
    %23 = vector.load %arg5[%22, %c0_11, %c0_12] : memref<8x8x128xf32, #tpu.memory_space<vmem>>, vector<1x8x128xf32>
    %24 = vector.shape_cast %23 : vector<1x8x128xf32> to vector<8x128xf32>
    %25 = vector.shape_cast %21 : vector<8x128xf32> to vector<1x8x128xf32>
    tpu.vector_store %arg5[%22, %c0_11, %c0_12], %25 {strides = array<i32>} : memref<8x8x128xf32, #tpu.memory_space<vmem>>, vector<1x8x128xf32>,
    %c1_i32 = arith.constant 1 : i32
    %26 = arith.index_cast %c1_i32 : i32 to index
    %c0_13 = arith.constant 0 : index
    %c0_14 = arith.constant 0 : index
    %27 = vector.load %arg1[%26, %c0_13, %c0_14] : memref<8x8x128xf32, #tpu.memory_space<vmem>>, vector<1x8x128xf32>
    %28 = vector.shape_cast %27 : vector<1x8x128xf32> to vector<8x128xf32>
    %cst_15 = arith.constant dense<0.000000e+00> : vector<8x128xf32>
    %29 = tpu.matmul %10, %3, %cst_15 {dimension_numbers = #tpu.dot_dimension_numbers<[1], [0], [0], [1], [0, 0, 1, 1], [], []>} : vector<8x128xf32>, vector<128x128xf32>, vector<8x128xf32> -> vector<8x128xf32>
    %30 = arith.addf %28, %29 : vector<8x128xf32>
    %31 = arith.addf %30, %4 : vector<8x128xf32>
    %cst_16 = arith.constant dense<0xFF800000> : vector<8xf32>
    %32 = vector.multi_reduction <maximumf>, %31, %cst_16 [1] : vector<8x128xf32> to vector<8xf32>
    %33 = vector.shape_cast %32 : vector<8xf32> to vector<8x1xf32>
    %34 = vector.broadcast %33 : vector<8x1xf32> to vector<8x128xf32>
    %35 = arith.subf %31, %34 : vector<8x128xf32>
    %36 = math.exp %35 : vector<8x128xf32>
    %cst_17 = arith.constant dense<0.000000e+00> : vector<8xf32>
    %37 = vector.multi_reduction <add>, %36, %cst_17 [1] : vector<8x128xf32> to vector<8xf32>
    %38 = vector.shape_cast %37 : vector<8xf32> to vector<8x1xf32>
    %39 = math.log %38 : vector<8x1xf32>
    %40 = vector.broadcast %39 : vector<8x1xf32> to vector<8x128xf32>
    %41 = arith.subf %35, %40 : vector<8x128xf32>
    %42 = arith.index_cast %c1_i32 : i32 to index
    %c0_18 = arith.constant 0 : index
    %c0_19 = arith.constant 0 : index
    %43 = vector.load %arg5[%42, %c0_18, %c0_19] : memref<8x8x128xf32, #tpu.memory_space<vmem>>, vector<1x8x128xf32>
    %44 = vector.shape_cast %43 : vector<1x8x128xf32> to vector<8x128xf32>
    %45 = vector.shape_cast %41 : vector<8x128xf32> to vector<1x8x128xf32>
    tpu.vector_store %arg5[%42, %c0_18, %c0_19], %45 {strides = array<i32>} : memref<8x8x128xf32, #tpu.memory_space<vmem>>, vector<1x8x128xf32>,
    %c2_i32 = arith.constant 2 : i32
    %46 = arith.index_cast %c2_i32 : i32 to index
    %c0_20 = arith.constant 0 : index
    %c0_21 = arith.constant 0 : index
    %47 = vector.load %arg1[%46, %c0_20, %c0_21] : memref<8x8x128xf32, #tpu.memory_space<vmem>>, vector<1x8x128xf32>
    %48 = vector.shape_cast %47 : vector<1x8x128xf32> to vector<8x128xf32>
    %cst_22 = arith.constant dense<0.000000e+00> : vector<8x128xf32>
    %49 = tpu.matmul %30, %3, %cst_22 {dimension_numbers = #tpu.dot_dimension_numbers<[1], [0], [0], [1], [0, 0, 1, 1], [], []>} : vector<8x128xf32>, vector<128x128xf32>, vector<8x128xf32> -> vector<8x128xf32>
    %50 = arith.addf %48, %49 : vector<8x128xf32>
    %51 = arith.addf %50, %4 : vector<8x128xf32>
    %cst_23 = arith.constant dense<0xFF800000> : vector<8xf32>
    %52 = vector.multi_reduction <maximumf>, %51, %cst_23 [1] : vector<8x128xf32> to vector<8xf32>
    %53 = vector.shape_cast %52 : vector<8xf32> to vector<8x1xf32>
    %54 = vector.broadcast %53 : vector<8x1xf32> to vector<8x128xf32>
    %55 = arith.subf %51, %54 : vector<8x128xf32>
    %56 = math.exp %55 : vector<8x128xf32>
    %cst_24 = arith.constant dense<0.000000e+00> : vector<8xf32>
    %57 = vector.multi_reduction <add>, %56, %cst_24 [1] : vector<8x128xf32> to vector<8xf32>
    %58 = vector.shape_cast %57 : vector<8xf32> to vector<8x1xf32>
    %59 = math.log %58 : vector<8x1xf32>
    %60 = vector.broadcast %59 : vector<8x1xf32> to vector<8x128xf32>
    %61 = arith.subf %55, %60 : vector<8x128xf32>
    %62 = arith.index_cast %c2_i32 : i32 to index
    %c0_25 = arith.constant 0 : index
    %c0_26 = arith.constant 0 : index
    %63 = vector.load %arg5[%62, %c0_25, %c0_26] : memref<8x8x128xf32, #tpu.memory_space<vmem>>, vector<1x8x128xf32>
    %64 = vector.shape_cast %63 : vector<1x8x128xf32> to vector<8x128xf32>
    %65 = vector.shape_cast %61 : vector<8x128xf32> to vector<1x8x128xf32>
    tpu.vector_store %arg5[%62, %c0_25, %c0_26], %65 {strides = array<i32>} : memref<8x8x128xf32, #tpu.memory_space<vmem>>, vector<1x8x128xf32>,
    %c3_i32 = arith.constant 3 : i32
    %66 = arith.index_cast %c3_i32 : i32 to index
    %c0_27 = arith.constant 0 : index
    %c0_28 = arith.constant 0 : index
    %67 = vector.load %arg1[%66, %c0_27, %c0_28] : memref<8x8x128xf32, #tpu.memory_space<vmem>>, vector<1x8x128xf32>
    %68 = vector.shape_cast %67 : vector<1x8x128xf32> to vector<8x128xf32>
    %cst_29 = arith.constant dense<0.000000e+00> : vector<8x128xf32>
    %69 = tpu.matmul %50, %3, %cst_29 {dimension_numbers = #tpu.dot_dimension_numbers<[1], [0], [0], [1], [0, 0, 1, 1], [], []>} : vector<8x128xf32>, vector<128x128xf32>, vector<8x128xf32> -> vector<8x128xf32>
    %70 = arith.addf %68, %69 : vector<8x128xf32>
    %71 = arith.addf %70, %4 : vector<8x128xf32>
    %cst_30 = arith.constant dense<0xFF800000> : vector<8xf32>
    %72 = vector.multi_reduction <maximumf>, %71, %cst_30 [1] : vector<8x128xf32> to vector<8xf32>
    %73 = vector.shape_cast %72 : vector<8xf32> to vector<8x1xf32>
    %74 = vector.broadcast %73 : vector<8x1xf32> to vector<8x128xf32>
    %75 = arith.subf %71, %74 : vector<8x128xf32>
    %76 = math.exp %75 : vector<8x128xf32>
    %cst_31 = arith.constant dense<0.000000e+00> : vector<8xf32>
    %77 = vector.multi_reduction <add>, %76, %cst_31 [1] : vector<8x128xf32> to vector<8xf32>
    %78 = vector.shape_cast %77 : vector<8xf32> to vector<8x1xf32>
    %79 = math.log %78 : vector<8x1xf32>
    %80 = vector.broadcast %79 : vector<8x1xf32> to vector<8x128xf32>
    %81 = arith.subf %75, %80 : vector<8x128xf32>
    %82 = arith.index_cast %c3_i32 : i32 to index
    %c0_32 = arith.constant 0 : index
    %c0_33 = arith.constant 0 : index
    %83 = vector.load %arg5[%82, %c0_32, %c0_33] : memref<8x8x128xf32, #tpu.memory_space<vmem>>, vector<1x8x128xf32>
    %84 = vector.shape_cast %83 : vector<1x8x128xf32> to vector<8x128xf32>
    %85 = vector.shape_cast %81 : vector<8x128xf32> to vector<1x8x128xf32>
    tpu.vector_store %arg5[%82, %c0_32, %c0_33], %85 {strides = array<i32>} : memref<8x8x128xf32, #tpu.memory_space<vmem>>, vector<1x8x128xf32>,
    %c4_i32 = arith.constant 4 : i32
    %86 = arith.index_cast %c4_i32 : i32 to index
    %c0_34 = arith.constant 0 : index
    %c0_35 = arith.constant 0 : index
    %87 = vector.load %arg1[%86, %c0_34, %c0_35] : memref<8x8x128xf32, #tpu.memory_space<vmem>>, vector<1x8x128xf32>
    %88 = vector.shape_cast %87 : vector<1x8x128xf32> to vector<8x128xf32>
    %cst_36 = arith.constant dense<0.000000e+00> : vector<8x128xf32>
    %89 = tpu.matmul %70, %3, %cst_36 {dimension_numbers = #tpu.dot_dimension_numbers<[1], [0], [0], [1], [0, 0, 1, 1], [], []>} : vector<8x128xf32>, vector<128x128xf32>, vector<8x128xf32> -> vector<8x128xf32>
    %90 = arith.addf %88, %89 : vector<8x128xf32>
    %91 = arith.addf %90, %4 : vector<8x128xf32>
    %cst_37 = arith.constant dense<0xFF800000> : vector<8xf32>
    %92 = vector.multi_reduction <maximumf>, %91, %cst_37 [1] : vector<8x128xf32> to vector<8xf32>
    %93 = vector.shape_cast %92 : vector<8xf32> to vector<8x1xf32>
    %94 = vector.broadcast %93 : vector<8x1xf32> to vector<8x128xf32>
    %95 = arith.subf %91, %94 : vector<8x128xf32>
    %96 = math.exp %95 : vector<8x128xf32>
    %cst_38 = arith.constant dense<0.000000e+00> : vector<8xf32>
    %97 = vector.multi_reduction <add>, %96, %cst_38 [1] : vector<8x128xf32> to vector<8xf32>
    %98 = vector.shape_cast %97 : vector<8xf32> to vector<8x1xf32>
    %99 = math.log %98 : vector<8x1xf32>
    %100 = vector.broadcast %99 : vector<8x1xf32> to vector<8x128xf32>
    %101 = arith.subf %95, %100 : vector<8x128xf32>
    %102 = arith.index_cast %c4_i32 : i32 to index
    %c0_39 = arith.constant 0 : index
    %c0_40 = arith.constant 0 : index
    %103 = vector.load %arg5[%102, %c0_39, %c0_40] : memref<8x8x128xf32, #tpu.memory_space<vmem>>, vector<1x8x128xf32>
    %104 = vector.shape_cast %103 : vector<1x8x128xf32> to vector<8x128xf32>
    %105 = vector.shape_cast %101 : vector<8x128xf32> to vector<1x8x128xf32>
    tpu.vector_store %arg5[%102, %c0_39, %c0_40], %105 {strides = array<i32>} : memref<8x8x128xf32, #tpu.memory_space<vmem>>, vector<1x8x128xf32>,
    %c5_i32 = arith.constant 5 : i32
    %106 = arith.index_cast %c5_i32 : i32 to index
    %c0_41 = arith.constant 0 : index
    %c0_42 = arith.constant 0 : index
    %107 = vector.load %arg1[%106, %c0_41, %c0_42] : memref<8x8x128xf32, #tpu.memory_space<vmem>>, vector<1x8x128xf32>
    %108 = vector.shape_cast %107 : vector<1x8x128xf32> to vector<8x128xf32>
    %cst_43 = arith.constant dense<0.000000e+00> : vector<8x128xf32>
    %109 = tpu.matmul %90, %3, %cst_43 {dimension_numbers = #tpu.dot_dimension_numbers<[1], [0], [0], [1], [0, 0, 1, 1], [], []>} : vector<8x128xf32>, vector<128x128xf32>, vector<8x128xf32> -> vector<8x128xf32>
    %110 = arith.addf %108, %109 : vector<8x128xf32>
    %111 = arith.addf %110, %4 : vector<8x128xf32>
    %cst_44 = arith.constant dense<0xFF800000> : vector<8xf32>
    %112 = vector.multi_reduction <maximumf>, %111, %cst_44 [1] : vector<8x128xf32> to vector<8xf32>
    %113 = vector.shape_cast %112 : vector<8xf32> to vector<8x1xf32>
    %114 = vector.broadcast %113 : vector<8x1xf32> to vector<8x128xf32>
    %115 = arith.subf %111, %114 : vector<8x128xf32>
    %116 = math.exp %115 : vector<8x128xf32>
    %cst_45 = arith.constant dense<0.000000e+00> : vector<8xf32>
    %117 = vector.multi_reduction <add>, %116, %cst_45 [1] : vector<8x128xf32> to vector<8xf32>
    %118 = vector.shape_cast %117 : vector<8xf32> to vector<8x1xf32>
    %119 = math.log %118 : vector<8x1xf32>
    %120 = vector.broadcast %119 : vector<8x1xf32> to vector<8x128xf32>
    %121 = arith.subf %115, %120 : vector<8x128xf32>
    %122 = arith.index_cast %c5_i32 : i32 to index
    %c0_46 = arith.constant 0 : index
    %c0_47 = arith.constant 0 : index
    %123 = vector.load %arg5[%122, %c0_46, %c0_47] : memref<8x8x128xf32, #tpu.memory_space<vmem>>, vector<1x8x128xf32>
    %124 = vector.shape_cast %123 : vector<1x8x128xf32> to vector<8x128xf32>
    %125 = vector.shape_cast %121 : vector<8x128xf32> to vector<1x8x128xf32>
    tpu.vector_store %arg5[%122, %c0_46, %c0_47], %125 {strides = array<i32>} : memref<8x8x128xf32, #tpu.memory_space<vmem>>, vector<1x8x128xf32>,
    %c6_i32 = arith.constant 6 : i32
    %126 = arith.index_cast %c6_i32 : i32 to index
    %c0_48 = arith.constant 0 : index
    %c0_49 = arith.constant 0 : index
    %127 = vector.load %arg1[%126, %c0_48, %c0_49] : memref<8x8x128xf32, #tpu.memory_space<vmem>>, vector<1x8x128xf32>
    %128 = vector.shape_cast %127 : vector<1x8x128xf32> to vector<8x128xf32>
    %cst_50 = arith.constant dense<0.000000e+00> : vector<8x128xf32>
    %129 = tpu.matmul %110, %3, %cst_50 {dimension_numbers = #tpu.dot_dimension_numbers<[1], [0], [0], [1], [0, 0, 1, 1], [], []>} : vector<8x128xf32>, vector<128x128xf32>, vector<8x128xf32> -> vector<8x128xf32>
    %130 = arith.addf %128, %129 : vector<8x128xf32>
    %131 = arith.addf %130, %4 : vector<8x128xf32>
    %cst_51 = arith.constant dense<0xFF800000> : vector<8xf32>
    %132 = vector.multi_reduction <maximumf>, %131, %cst_51 [1] : vector<8x128xf32> to vector<8xf32>
    %133 = vector.shape_cast %132 : vector<8xf32> to vector<8x1xf32>
    %134 = vector.broadcast %133 : vector<8x1xf32> to vector<8x128xf32>
    %135 = arith.subf %131, %134 : vector<8x128xf32>
    %136 = math.exp %135 : vector<8x128xf32>
    %cst_52 = arith.constant dense<0.000000e+00> : vector<8xf32>
    %137 = vector.multi_reduction <add>, %136, %cst_52 [1] : vector<8x128xf32> to vector<8xf32>
    %138 = vector.shape_cast %137 : vector<8xf32> to vector<8x1xf32>
    %139 = math.log %138 : vector<8x1xf32>
    %140 = vector.broadcast %139 : vector<8x1xf32> to vector<8x128xf32>
    %141 = arith.subf %135, %140 : vector<8x128xf32>
    %142 = arith.index_cast %c6_i32 : i32 to index
    %c0_53 = arith.constant 0 : index
    %c0_54 = arith.constant 0 : index
    %143 = vector.load %arg5[%142, %c0_53, %c0_54] : memref<8x8x128xf32, #tpu.memory_space<vmem>>, vector<1x8x128xf32>
    %144 = vector.shape_cast %143 : vector<1x8x128xf32> to vector<8x128xf32>
    %145 = vector.shape_cast %141 : vector<8x128xf32> to vector<1x8x128xf32>
    tpu.vector_store %arg5[%142, %c0_53, %c0_54], %145 {strides = array<i32>} : memref<8x8x128xf32, #tpu.memory_space<vmem>>, vector<1x8x128xf32>,
    %c7_i32 = arith.constant 7 : i32
    %146 = arith.index_cast %c7_i32 : i32 to index
    %c0_55 = arith.constant 0 : index
    %c0_56 = arith.constant 0 : index
    %147 = vector.load %arg1[%146, %c0_55, %c0_56] : memref<8x8x128xf32, #tpu.memory_space<vmem>>, vector<1x8x128xf32>
    %148 = vector.shape_cast %147 : vector<1x8x128xf32> to vector<8x128xf32>
    %cst_57 = arith.constant dense<0.000000e+00> : vector<8x128xf32>
    %149 = tpu.matmul %130, %3, %cst_57 {dimension_numbers = #tpu.dot_dimension_numbers<[1], [0], [0], [1], [0, 0, 1, 1], [], []>} : vector<8x128xf32>, vector<128x128xf32>, vector<8x128xf32> -> vector<8x128xf32>
    %150 = arith.addf %148, %149 : vector<8x128xf32>
    %151 = arith.addf %150, %4 : vector<8x128xf32>
    %cst_58 = arith.constant dense<0xFF800000> : vector<8xf32>
    %152 = vector.multi_reduction <maximumf>, %151, %cst_58 [1] : vector<8x128xf32> to vector<8xf32>
    %153 = vector.shape_cast %152 : vector<8xf32> to vector<8x1xf32>
    %154 = vector.broadcast %153 : vector<8x1xf32> to vector<8x128xf32>
    %155 = arith.subf %151, %154 : vector<8x128xf32>
    %156 = math.exp %155 : vector<8x128xf32>
    %cst_59 = arith.constant dense<0.000000e+00> : vector<8xf32>
    %157 = vector.multi_reduction <add>, %156, %cst_59 [1] : vector<8x128xf32> to vector<8xf32>
    %158 = vector.shape_cast %157 : vector<8xf32> to vector<8x1xf32>
    %159 = math.log %158 : vector<8x1xf32>
    %160 = vector.broadcast %159 : vector<8x1xf32> to vector<8x128xf32>
    %161 = arith.subf %155, %160 : vector<8x128xf32>
    %162 = arith.index_cast %c7_i32 : i32 to index
    %c0_60 = arith.constant 0 : index
    %c0_61 = arith.constant 0 : index
    %163 = vector.load %arg5[%162, %c0_60, %c0_61] : memref<8x8x128xf32, #tpu.memory_space<vmem>>, vector<1x8x128xf32>
    %164 = vector.shape_cast %163 : vector<1x8x128xf32> to vector<8x128xf32>
    %165 = vector.shape_cast %161 : vector<8x128xf32> to vector<1x8x128xf32>
    tpu.vector_store %arg5[%162, %c0_60, %c0_61], %165 {strides = array<i32>} : memref<8x8x128xf32, #tpu.memory_space<vmem>>, vector<1x8x128xf32>,
    %c8_i32 = arith.constant 8 : i32
    %c0_62 = arith.constant 0 : index
    %c0_63 = arith.constant 0 : index
    %166 = vector.load %arg6[%c0_62, %c0_63] : memref<8x128xf32, #tpu.memory_space<vmem>>, vector<8x128xf32>
    tpu.vector_store %arg6[%c0_62, %c0_63], %150 {strides = array<i32>} : memref<8x128xf32, #tpu.memory_space<vmem>>, vector<8x128xf32>,
    return
  }
  func.func @transform_0(%arg0: i32) -> (i32, i32, i32) {
    %c0_i32 = arith.constant 0 : i32
    %c0_i32_0 = arith.constant 0 : i32
    %c0_i32_1 = arith.constant 0 : i32
    return %arg0, %c0_i32, %c0_i32_0 : i32, i32, i32
  }
  func.func @transform_1(%arg0: i32) -> (i32, i32) {
    %c0_i32 = arith.constant 0 : i32
    %c0_i32_0 = arith.constant 0 : i32
    %c0_i32_1 = arith.constant 0 : i32
    return %c0_i32, %c0_i32_0 : i32, i32
  }
  func.func @transform_2(%arg0: i32) -> (i32, i32) {
    %c0_i32 = arith.constant 0 : i32
    %c0_i32_0 = arith.constant 0 : i32
    %c0_i32_1 = arith.constant 0 : i32
    return %c0_i32, %c0_i32_0 : i32, i32
  }
  func.func @transform_3(%arg0: i32) -> (i32, i32) {
    %c0_i32 = arith.constant 0 : i32
    %c0_i32_0 = arith.constant 0 : i32
    %c0_i32_1 = arith.constant 0 : i32
    return %c0_i32, %c0_i32_0 : i32, i32
  }
  func.func @transform_4(%arg0: i32) -> (i32, i32, i32) {
    %c0_i32 = arith.constant 0 : i32
    %c0_i32_0 = arith.constant 0 : i32
    %c0_i32_1 = arith.constant 0 : i32
    return %arg0, %c0_i32, %c0_i32_0 : i32, i32, i32
  }
  func.func @transform_5(%arg0: i32) -> (i32, i32) {
    %c0_i32 = arith.constant 0 : i32
    %c0_i32_0 = arith.constant 0 : i32
    %c0_i32_1 = arith.constant 0 : i32
    return %c0_i32, %c0_i32_0 : i32, i32
  }
}

</mosaic_0001>

<bundles_post_ra>
// kernel: rnn_sequence_forward.1
= control target key start
LH: loop header
LB: loop body
LE: loop exit
PB: predicated region body
PF: predicated region fallthrough
CT: control target
= control target key end

     0   :  { %v1395_v0 = vmov 0.0|0.0   ;;  %vm1396_vm0 = vmmov 0   ;;  %v1397_v4 = vmov 0.0   ;;  %s1719_s2 = inlined_call_operand.vmem [shape: f32[128,128], index: 2, kind: input, shape index: {}]   ;;  %s1720_s1 = inlined_call_operand.vmem [shape: f32[8,128], index: 1, kind: input, shape index: {}]   ;;  %s1721_s0 = inlined_call_operand.vmem [shape: f32[8,8,128], index: 0, kind: input, shape index: {}]   ;;  %s1722_s3 = inlined_call_operand.vmem [shape: f32[8,128], index: 3, kind: input, shape index: {}]   ;;  %s1723_s4 = inlined_call_operand.vmem [shape: f32[8,8,128], index: 4, kind: output, shape index: {0}]   ;;  %s1724_s5 = inlined_call_operand.vmem [shape: f32[8,128], index: 5, kind: output, shape index: {1}]  }
   0x1   :  { %1168 = vmatprep.subr.bf16.mxu0 %v1395_v0  ;;  %v25_v1 = vld [vmem:[%s1719_s2] sm:$0xff]  ;;  %v26_v2 = vld [vmem:[%s1719_s2 + $0x8] sm:$0xff]  ;;  %v27_v3 = vld [vmem:[%s1719_s2 + $0x10] sm:$0xff]  ;;  %920 = vmatprep.mubr.msk.f32.mxu0 %vm1396_vm0, %v1397_v4 }
   0x2   :  { %v1440_v5 = vpack.c.bf16 %v26_v2, %v25_v1  ;;  %v28_v6 = vld [vmem:[%s1719_s2 + $0x18] sm:$0xff]  ;;  %1192 = vmatprep.subr.bf16.mxu1 %v1395_v0  ;;  %955 = vmatprep.mubr.msk.f32.mxu1 %vm1396_vm0, %v1397_v4  ;;  %v29_v8 = vld [vmem:[%s1719_s2 + $0x20] sm:$0xff]  ;;  %v30_v9 = vld [vmem:[%s1719_s2 + $0x28] sm:$0xff] }
   0x3   :  { %v1449_v7 = vpack.c.bf16 %v28_v6, %v27_v3  ;;  %v1461_v10 = vpack.c.bf16 %v30_v9, %v29_v8  ;;  %v31_v11 = vld [vmem:[%s1719_s2 + $0x30] sm:$0xff]  ;;  %v32_v12 = vld [vmem:[%s1719_s2 + $0x38] sm:$0xff]  ;;  %v33_v14 = vld [vmem:[%s1719_s2 + $0x40] sm:$0xff] }
   0x4   :  { %1170 = vmatpush3.bf16.msra.mxu0 %v1440_v5  ;;  %1194 = vmatpush3.bf16.msra.mxu1 %v1440_v5  ;;  %v1473_v13 = vpack.c.bf16 %v32_v12, %v31_v11  ;;  %v34_v15 = vld [vmem:[%s1719_s2 + $0x48] sm:$0xff]  ;;  %v35_v17 = vld [vmem:[%s1719_s2 + $0x50] sm:$0xff]  ;;  %v36_v18 = vld [vmem:[%s1719_s2 + $0x58] sm:$0xff] }
   0x5   :  { %1171 = vmatprep.subr.bf16.mxu0 %v1395_v0  ;;  %1195 = vmatprep.subr.bf16.mxu1 %v1395_v0  ;;  %v1485_v16 = vpack.c.bf16 %v34_v15, %v33_v14  ;;  %v1497_v19 = vpack.c.bf16 %v36_v18, %v35_v17  ;;  %v37_v20 = vld [vmem:[%s1719_s2 + $0x60] sm:$0xff]  ;;  %v38_v21 = vld [vmem:[%s1719_s2 + $0x68] sm:$0xff]  ;;  %v39_v23 = vld [vmem:[%s1719_s2 + $0x70] sm:$0xff] }
   0x6   :  { %v1509_v22 = vpack.c.bf16 %v38_v21, %v37_v20  ;;  %v40_v24 = vld [vmem:[%s1719_s2 + $0x78] sm:$0xff]  ;;  %v23_v26 = vld [vmem:[%s1720_s1] sm:$0xff]  ;;  %v738_v33 = vld [vmem:[%s1721_s0 + $0x8] sm:$0xff] }
   0x7   :  { %v1521_v25 = vpack.c.bf16 %v40_v24, %v39_v23  ;;  %v43_v27 = vld [vmem:[%s1721_s0] sm:$0xff]  ;;  %v740_v38 = vld [vmem:[%s1721_s0 + $0x10] sm:$0xff]  ;;  %v742_v43 = vld [vmem:[%s1721_s0 + $0x18] sm:$0xff] }
   0x8   :  { %1173 = vmatpush3.bf16.msra.mxu0 %v1449_v7  ;;  %1197 = vmatpush3.bf16.msra.mxu1 %v1449_v7  ;;  %v1557_v29 = vld [vmem:[%s1722_s3] sm:$0xff]  ;;  %v746_v53 = vld [vmem:[%s1721_s0 + $0x28] sm:$0xff]  ;;  %v748_v3 = vld [vmem:[%s1721_s0 + $0x30] sm:$0xff] }
   0x9   :  { %1174 = vmatprep.subr.bf16.mxu0 %v1395_v0  ;;  %1198 = vmatprep.subr.bf16.mxu1 %v1395_v0  ;;  %v744_v48 = vld [vmem:[%s1721_s0 + $0x20] sm:$0xff] }
   0xc   :  { %1176 = vmatpush3.bf16.msra.mxu0 %v1461_v10  ;;  %1200 = vmatpush3.bf16.msra.mxu1 %v1461_v10 }
   0xd   :  { %1177 = vmatprep.subr.bf16.mxu0 %v1395_v0  ;;  %1201 = vmatprep.subr.bf16.mxu1 %v1395_v0 }
  0x10   :  { %1179 = vmatpush3.bf16.msra.mxu0 %v1473_v13  ;;  %1203 = vmatpush3.bf16.msra.mxu1 %v1473_v13 }
  0x11   :  { %1180 = vmatprep.subr.bf16.mxu0 %v1395_v0  ;;  %1204 = vmatprep.subr.bf16.mxu1 %v1395_v0 }
  0x14   :  { %1182 = vmatpush3.bf16.msra.mxu0 %v1485_v16  ;;  %1206 = vmatpush3.bf16.msra.mxu1 %v1485_v16 }
  0x15   :  { %1183 = vmatprep.subr.bf16.mxu0 %v1395_v0  ;;  %1207 = vmatprep.subr.bf16.mxu1 %v1395_v0 }
  0x18   :  { %1185 = vmatpush3.bf16.msra.mxu0 %v1497_v19  ;;  %1209 = vmatpush3.bf16.msra.mxu1 %v1497_v19 }
  0x19   :  { %1186 = vmatprep.subr.bf16.mxu0 %v1395_v0  ;;  %1210 = vmatprep.subr.bf16.mxu1 %v1395_v0 }
  0x1c   :  { %1188 = vmatpush3.bf16.msra.mxu0 %v1509_v22  ;;  %1212 = vmatpush3.bf16.msra.mxu1 %v1509_v22 }
  0x1d   :  { %1189 = vmatprep.subr.bf16.mxu0 %v1395_v0  ;;  %1213 = vmatprep.subr.bf16.mxu1 %v1395_v0 }
  0x20   :  { %1191 = vmatpush3.bf16.msra.mxu0 %v1521_v25  ;;  %1215 = vmatpush3.bf16.msra.mxu1 %v1521_v25 }
  0x21   :  { %1216 = vmatprep.subr.bf16.mxu0 %v1395_v0  ;;  %1240 = vmatprep.subr.bf16.mxu1 %v1395_v0 }
  0x23   :  { %921 = vmatmul.mubr.f32.vlgmr.msra.gmra.mrb[0].mxu0 %v23_v26 }
  0x24   :  { %1218 = vmatpush3.bf16.msra.mxu0 %v1440_v5  ;;  %990 = vmatprep.mubr.msk.f32.mxu0 %vm1396_vm0, %v1397_v4 }
  0x25   :  { %1219 = vmatprep.subr.bf16.mxu0 %v1395_v0 }
  0x28   :  { %1221 = vmatpush3.bf16.msra.mxu0 %v1449_v7 }
  0x29   :  { %1222 = vmatprep.subr.bf16.mxu0 %v1395_v0 }
  0x2c   :  { %1224 = vmatpush3.bf16.msra.mxu0 %v1461_v10 }
  0x2d   :  { %1225 = vmatprep.subr.bf16.mxu0 %v1395_v0 }
  0x30   :  { %1227 = vmatpush3.bf16.msra.mxu0 %v1473_v13 }
  0x31   :  { %1228 = vmatprep.subr.bf16.mxu0 %v1395_v0 }
  0x34   :  { %1230 = vmatpush3.bf16.msra.mxu0 %v1485_v16 }
  0x35   :  { %1231 = vmatprep.subr.bf16.mxu0 %v1395_v0 }
  0x38   :  { %1233 = vmatpush3.bf16.msra.mxu0 %v1497_v19 }
  0x39   :  { %1234 = vmatprep.subr.bf16.mxu0 %v1395_v0 }
  0x3c   :  { %1236 = vmatpush3.bf16.msra.mxu0 %v1509_v22 }
  0x3d   :  { %1237 = vmatprep.subr.bf16.mxu0 %v1395_v0 }
  0x40   :  { %1239 = vmatpush3.bf16.msra.mxu0 %v1521_v25 }
  0x41   :  { %1264 = vmatprep.subr.bf16.mxu0 %v1395_v0 }
  0xf6   :  { %v110_v28 = vpop.f32.mrb[0].mxu0 }
  0xf7   :  { %v114_v30 = vadd.f32 %v110_v28, %v43_v27  ;;  %v922_v31 = vpop.f32.mrb[1].mxu0 }
  0xf9   :  { %956 = vmatmul.mubr.f32.vlgmr.msra.gmra.mrb[0].mxu1 %v114_v30  ;;  %v1560_v32 = vadd.f32 %v114_v30, %v1557_v29 }
  0xfa   :  { %1242 = vmatpush3.bf16.msra.mxu1 %v1440_v5  ;;  %1025 = vmatprep.mubr.msk.f32.mxu1 %vm1396_vm0, %v1397_v4 }
  0xfb   :  { %116 = vmax.xlane.f32.xlu0 %v1560_v32  ;;  %1243 = vmatprep.subr.bf16.mxu1 %v1395_v0 }
  0xfe   :  { %1245 = vmatpush3.bf16.msra.mxu1 %v1449_v7 }
  0xff   :  { %1246 = vmatprep.subr.bf16.mxu1 %v1395_v0 }
 0x102   :  { %1248 = vmatpush3.bf16.msra.mxu1 %v1461_v10 }
 0x103   :  { %1249 = vmatprep.subr.bf16.mxu1 %v1395_v0 }
 0x106   :  { %1251 = vmatpush3.bf16.msra.mxu1 %v1473_v13 }
 0x107   :  { %1252 = vmatprep.subr.bf16.mxu1 %v1395_v0 }
 0x10a   :  { %1254 = vmatpush3.bf16.msra.mxu1 %v1485_v16 }
 0x10b   :  { %1255 = vmatprep.subr.bf16.mxu1 %v1395_v0 }
 0x10e   :  { %1257 = vmatpush3.bf16.msra.mxu1 %v1497_v19 }
 0x10f   :  { %1258 = vmatprep.subr.bf16.mxu1 %v1395_v0 }
 0x112   :  { %1260 = vmatpush3.bf16.msra.mxu1 %v1509_v22 }
 0x113   :  { %1261 = vmatprep.subr.bf16.mxu1 %v1395_v0 }
 0x116   :  { %1263 = vmatpush3.bf16.msra.mxu1 %v1521_v25 }
 0x117   :  { %1288 = vmatprep.subr.bf16.mxu1 %v1395_v0 }
 0x188   :  { %v117_v58 = vpop.xlane.xlu0 %116 }
 0x189   :  { %v118_v59 = vsub.f32 %v1560_v32, %v117_v58 }
 0x18b   :  { %v119_v62 = vmul.f32 1.442695, %v118_v59 }
 0x18d   :  { %1363 = vpow2.f32 %v119_v62 }
 0x197   :  { %v1364_v9 = vpop.eup %1363 }
 0x1cc   :  { %v195_v34 = vpop.f32.mrb[0].mxu1 }
 0x1cd   :  { %v199_v35 = vadd.f32 %v738_v33, %v195_v34  ;;  %v957_v36 = vpop.f32.mrb[1].mxu1 }
 0x1ce   :  { %v750_v36 = vld [vmem:[%s1721_s0 + $0x38] sm:$0xff] }
 0x1cf   :  { %991 = vmatmul.mubr.f32.vlgmr.msra.gmra.mrb[2].mxu0 %v199_v35  ;;  %v1585_v37 = vadd.f32 %v199_v35, %v1557_v29 }
 0x1d0   :  { %1266 = vmatpush3.bf16.msra.mxu0 %v1440_v5  ;;  %1060 = vmatprep.mubr.msk.f32.mxu0 %vm1396_vm0, %v1397_v4 }
 0x1d1   :  { %201 = vmax.xlane.f32.xlu0 %v1585_v37  ;;  %1267 = vmatprep.subr.bf16.mxu0 %v1395_v0 }
 0x1d4   :  { %1269 = vmatpush3.bf16.msra.mxu0 %v1449_v7 }
 0x1d5   :  { %1270 = vmatprep.subr.bf16.mxu0 %v1395_v0 }
 0x1d8   :  { %1272 = vmatpush3.bf16.msra.mxu0 %v1461_v10 }
 0x1d9   :  { %1273 = vmatprep.subr.bf16.mxu0 %v1395_v0 }
 0x1dc   :  { %1275 = vmatpush3.bf16.msra.mxu0 %v1473_v13 }
 0x1dd   :  { %1276 = vmatprep.subr.bf16.mxu0 %v1395_v0 }
 0x1e0   :  { %1278 = vmatpush3.bf16.msra.mxu0 %v1485_v16 }
 0x1e1   :  { %1279 = vmatprep.subr.bf16.mxu0 %v1395_v0 }
 0x1e4   :  { %1281 = vmatpush3.bf16.msra.mxu0 %v1497_v19 }
 0x1e5   :  { %1282 = vmatprep.subr.bf16.mxu0 %v1395_v0 }
 0x1e8   :  { %1284 = vmatpush3.bf16.msra.mxu0 %v1509_v22 }
 0x1e9   :  { %1285 = vmatprep.subr.bf16.mxu0 %v1395_v0 }
 0x1ec   :  { %1287 = vmatpush3.bf16.msra.mxu0 %v1521_v25 }
 0x1ed   :  { %1312 = vmatprep.subr.bf16.mxu0 %v1395_v0 }
 0x25e   :  { %v202_v60 = vpop.xlane.xlu0 %201 }
 0x25f   :  { %v203_v28 = vsub.f32 %v1585_v37, %v202_v60 }
 0x261   :  { %v204_v31 = vmul.f32 1.442695, %v203_v28 }
 0x2a2   :  { %v281_v39 = vpop.f32.mrb[2].mxu0 }
 0x2a3   :  { %v285_v40 = vadd.f32 %v740_v38, %v281_v39  ;;  %v992_v41 = vpop.f32.mrb[3].mxu0 }
 0x2a5   :  { %1026 = vmatmul.mubr.f32.vlgmr.msra.gmra.mrb[2].mxu1 %v285_v40  ;;  %v1610_v42 = vadd.f32 %v285_v40, %v1557_v29 }
 0x2a6   :  { %1290 = vmatpush3.bf16.msra.mxu1 %v1440_v5  ;;  %1095 = vmatprep.mubr.msk.f32.mxu1 %vm1396_vm0, %v1397_v4 }
 0x2a7   :  { %287 = vmax.xlane.f32.xlu1 %v1610_v42  ;;  %1291 = vmatprep.subr.bf16.mxu1 %v1395_v0 }
 0x2aa   :  { %1293 = vmatpush3.bf16.msra.mxu1 %v1449_v7 }
 0x2ab   :  { %1294 = vmatprep.subr.bf16.mxu1 %v1395_v0 }
 0x2ae   :  { %1296 = vmatpush3.bf16.msra.mxu1 %v1461_v10 }
 0x2af   :  { %1297 = vmatprep.subr.bf16.mxu1 %v1395_v0 }
 0x2b2   :  { %1299 = vmatpush3.bf16.msra.mxu1 %v1473_v13 }
 0x2b3   :  { %1300 = vmatprep.subr.bf16.mxu1 %v1395_v0 }
 0x2b6   :  { %1302 = vmatpush3.bf16.msra.mxu1 %v1485_v16 }
 0x2b7   :  { %1303 = vmatprep.subr.bf16.mxu1 %v1395_v0 }
 0x2ba   :  { %1305 = vmatpush3.bf16.msra.mxu1 %v1497_v19 }
 0x2bb   :  { %1306 = vmatprep.subr.bf16.mxu1 %v1395_v0 }
 0x2be   :  { %1308 = vmatpush3.bf16.msra.mxu1 %v1509_v22 }
 0x2bf   :  { %1309 = vmatprep.subr.bf16.mxu1 %v1395_v0 }
 0x2c2   :  { %1311 = vmatpush3.bf16.msra.mxu1 %v1521_v25 }
 0x2c3   :  { %1336 = vmatprep.subr.bf16.mxu1 %v1395_v0 }
 0x334   :  { %v288_v61 = vpop.xlane.xlu1 %287 }
 0x335   :  { %v289_v63 = vsub.f32 %v1610_v42, %v288_v61 }
 0x337   :  { %v290_v1 = vmul.f32 1.442695, %v289_v63 }
 0x339   :  { %1365 = vpow2.f32 %v290_v1 }
 0x378   :  { %v367_v44 = vpop.f32.mrb[2].mxu1 }
 0x379   :  { %v371_v45 = vadd.f32 %v742_v43, %v367_v44  ;;  %v1027_v46 = vpop.f32.mrb[3].mxu1 }
 0x37b   :  { %1061 = vmatmul.mubr.f32.vlgmr.msra.gmra.mrb[4].mxu0 %v371_v45  ;;  %v1635_v47 = vadd.f32 %v371_v45, %v1557_v29 }
 0x37c   :  { %1314 = vmatpush3.bf16.msra.mxu0 %v1440_v5  ;;  %1130 = vmatprep.mubr.msk.f32.mxu0 %vm1396_vm0, %v1397_v4 }
 0x37d   :  { %373 = vmax.xlane.f32.xlu1 %v1635_v47  ;;  %1315 = vmatprep.subr.bf16.mxu0 %v1395_v0 }
 0x380   :  { %1317 = vmatpush3.bf16.msra.mxu0 %v1449_v7 }
 0x381   :  { %1318 = vmatprep.subr.bf16.mxu0 %v1395_v0 }
 0x384   :  { %1320 = vmatpush3.bf16.msra.mxu0 %v1461_v10 }
 0x385   :  { %1321 = vmatprep.subr.bf16.mxu0 %v1395_v0 }
 0x388   :  { %1323 = vmatpush3.bf16.msra.mxu0 %v1473_v13 }
 0x389   :  { %1324 = vmatprep.subr.bf16.mxu0 %v1395_v0 }
 0x38c   :  { %1326 = vmatpush3.bf16.msra.mxu0 %v1485_v16 }
 0x38d   :  { %1327 = vmatprep.subr.bf16.mxu0 %v1395_v0 }
 0x390   :  { %1329 = vmatpush3.bf16.msra.mxu0 %v1497_v19 }
 0x391   :  { %1330 = vmatprep.subr.bf16.mxu0 %v1395_v0 }
 0x394   :  { %1332 = vmatpush3.bf16.msra.mxu0 %v1509_v22 }
 0x395   :  { %1333 = vmatprep.subr.bf16.mxu0 %v1395_v0 }
 0x398   :  { %1335 = vmatpush3.bf16.msra.mxu0 %v1521_v25 }
 0x40a   :  { %v374_v30 = vpop.xlane.xlu1 %373 }
 0x40b   :  { %v375_v32 = vsub.f32 %v1635_v47, %v374_v30 }
 0x40d   :  { %v376_v34 = vmul.f32 1.442695, %v375_v32 }
 0x44e   :  { %v453_v49 = vpop.f32.mrb[4].mxu0 }
 0x44f   :  { %v457_v50 = vadd.f32 %v744_v48, %v453_v49  ;;  %v1062_v51 = vpop.f32.mrb[5].mxu0 }
 0x451   :  { %1096 = vmatmul.mubr.f32.vlgmr.msra.gmra.mrb[4].mxu1 %v457_v50  ;;  %v458_v52 = vadd.f32 %v457_v50, %v1557_v29 }
 0x452   :  { %1338 = vmatpush3.bf16.msra.mxu1 %v1440_v5  ;;  %1165 = vmatprep.mubr.msk.f32.mxu1 %vm1396_vm0, %v1397_v4 }
 0x453   :  { %459 = vmax.xlane.f32.xlu0 %v458_v52  ;;  %1339 = vmatprep.subr.bf16.mxu1 %v1395_v0 }
 0x456   :  { %1341 = vmatpush3.bf16.msra.mxu1 %v1449_v7 }
 0x457   :  { %1342 = vmatprep.subr.bf16.mxu1 %v1395_v0 }
 0x45a   :  { %1344 = vmatpush3.bf16.msra.mxu1 %v1461_v10  ;;  %v1366_v10 = vpop.eup %1365 }
 0x45b   :  { %1345 = vmatprep.subr.bf16.mxu1 %v1395_v0 }
 0x45e   :  { %1347 = vmatpush3.bf16.msra.mxu1 %v1473_v13 }
 0x45f   :  { %1348 = vmatprep.subr.bf16.mxu1 %v1395_v0 }
 0x462   :  { %1350 = vmatpush3.bf16.msra.mxu1 %v1485_v16 }
 0x463   :  { %1351 = vmatprep.subr.bf16.mxu1 %v1395_v0 }
 0x466   :  { %1353 = vmatpush3.bf16.msra.mxu1 %v1497_v19 }
 0x467   :  { %1354 = vmatprep.subr.bf16.mxu1 %v1395_v0 }
 0x46a   :  { %1356 = vmatpush3.bf16.msra.mxu1 %v1509_v22 }
 0x46b   :  { %1357 = vmatprep.subr.bf16.mxu1 %v1395_v0 }
 0x46e   :  { %1359 = vmatpush3.bf16.msra.mxu1 %v1521_v25 }
 0x4e0   :  { %v460_v0 = vpop.xlane.xlu0 %459 }
 0x4e1   :  { %v461_v2 = vsub.f32 %v458_v52, %v460_v0 }
 0x4e3   :  { %v462_v7 = vmul.f32 1.442695, %v461_v2 }
 0x4e5   :  { %1367 = vpow2.f32 %v462_v7 }
 0x4ef   :  { %v1368_v11 = vpop.eup %1367 }
 0x524   :  { %v539_v54 = vpop.f32.mrb[4].mxu1 }
 0x525   :  { %v543_v55 = vadd.f32 %v746_v53, %v539_v54  ;;  %v1097_v56 = vpop.f32.mrb[5].mxu1 }
 0x527   :  { %1131 = vmatmul.mubr.f32.vlgmr.msra.gmra.mrb[6].mxu0 %v543_v55  ;;  %v544_v57 = vadd.f32 %v543_v55, %v1557_v29 }
 0x529   :  { %545 = vmax.xlane.f32.xlu1 %v544_v57 }
 0x5b6   :  { %v546_v33 = vpop.xlane.xlu1 %545 }
 0x5b7   :  { %v547_v35 = vsub.f32 %v544_v57, %v546_v33 }
 0x5b9   :  { %v548_v41 = vmul.f32 1.442695, %v547_v35 }
 0x5fa   :  { %v625_v4 = vpop.f32.mrb[6].mxu0 }
 0x5fb   :  { %v629_v5 = vadd.f32 %v748_v3, %v625_v4  ;;  %v1132_v6 = vpop.f32.mrb[7].mxu0 }
 0x5fd   :  { %1166 = vmatmul.mubr.f32.vlgmr.msra.gmra.mrb[6].mxu1 %v629_v5  ;;  %v630_v8 = vadd.f32 %v629_v5, %v1557_v29 }
 0x5ff   :  { %631 = vmax.xlane.f32.xlu0 %v630_v8 }
 0x603   :  { %121 = vadd.xlane.f32.xlu0 %v1364_v9 }
 0x607   :  { %292 = vadd.xlane.f32.xlu0 %v1366_v10 }
 0x60b   :  { %464 = vadd.xlane.f32.xlu0 %v1368_v11 }
 0x68c   :  { %v632_v12 = vpop.xlane.xlu0 %631 }
 0x68d   :  { %v633_v13 = vsub.f32 %v630_v8, %v632_v12 }
 0x68f   :  { %v634_v14 = vmul.f32 1.442695, %v633_v13 }
 0x690   :  { %v122_v15 = vpop.xlane.xlu0 %121 }
 0x691   :  { %1369 = vpow2.f32 %v634_v14 }
 0x692   :  { %1371 = vlog2.f32 %v122_v15 }
 0x694   :  { %v293_v16 = vpop.xlane.xlu0 %292 }
 0x695   :  { %1373 = vlog2.f32 %v293_v16 }
 0x698   :  { %v465_v17 = vpop.xlane.xlu0 %464 }
 0x699   :  { %1375 = vlog2.f32 %v465_v17 }
 0x69a   :  { %1377 = vpow2.f32 %v204_v31 }
 0x69b   :  { %v1370_v18 = vpop.eup %1369  ;;  %1379 = vpow2.f32 %v376_v34 }
 0x69c   :  { %v1372_v19 = vpop.eup %1371  ;;  %636 = vadd.xlane.f32.xlu0 %v1370_v18  ;;  %1381 = vpow2.f32 %v548_v41 }
 0x69d   :  { %v124_v20 = vmul.f32 0.6931472, %v1372_v19 }
 0x69f   :  { %v1374_v21 = vpop.eup %1373  ;;  %v125_v22 = vsub.f32 %v118_v59, %v124_v20 }
 0x6a0   :  { %v295_v23 = vmul.f32 0.6931472, %v1374_v21 }
 0x6a1   :  { %126 = vst [vmem:[%s1723_s4] sm:$0xff] %v125_v22 }
 0x6a2   :  { %v296_v24 = vsub.f32 %v289_v63, %v295_v23 }
 0x6a3   :  { %v1376_v25 = vpop.eup %1375 }
 0x6a4   :  { %741 = vst [vmem:[%s1723_s4 + $0x10] sm:$0xff] %v296_v24  ;;  %v467_v26 = vmul.f32 0.6931472, %v1376_v25  ;;  %v1378_v42 = vpop.eup %1377 }
 0x6a5   :  { %v1380_v43 = vpop.eup %1379 }
 0x6a6   :  { %v468_v27 = vsub.f32 %v461_v2, %v467_v26  ;;  %v1382_v44 = vpop.eup %1381 }
 0x6a8   :  { %745 = vst [vmem:[%s1723_s4 + $0x20] sm:$0xff] %v468_v27 }
 0x6d0   :  { %v711_v38 = vpop.f32.mrb[6].mxu1 }
 0x6d1   :  { %v715_v39 = vadd.f32 %v750_v36, %v711_v38  ;;  %v1167_v40 = vpop.f32.mrb[7].mxu1 }
 0x6d3   :  { %729 = vst [vmem:[%s1724_s5] sm:$0xff] %v715_v39  ;;  %v716_v37 = vadd.f32 %v715_v39, %v1557_v29 }
 0x6d5   :  { %717 = vmax.xlane.f32.xlu1 %v716_v37 }
 0x6d9   :  { %206 = vadd.xlane.f32.xlu1 %v1378_v42 }
 0x6dd   :  { %378 = vadd.xlane.f32.xlu1 %v1380_v43 }
 0x6e1   :  { %550 = vadd.xlane.f32.xlu1 %v1382_v44 }
 0x729   :  { %v637_v45 = vpop.xlane.xlu0 %636 }
 0x72a   :  { %1383 = vlog2.f32 %v637_v45 }
 0x734   :  { %v1384_v46 = vpop.eup %1383 }
 0x735   :  { %v639_v47 = vmul.f32 0.6931472, %v1384_v46 }
 0x737   :  { %v640_v48 = vsub.f32 %v633_v13, %v639_v47 }
 0x739   :  { %749 = vst [vmem:[%s1723_s4 + $0x30] sm:$0xff] %v640_v48 }
 0x762   :  { %v718_v49 = vpop.xlane.xlu1 %717 }
 0x763   :  { %v719_v50 = vsub.f32 %v716_v37, %v718_v49 }
 0x765   :  { %v720_v29 = vmul.f32 1.442695, %v719_v50 }
 0x766   :  { %v207_v51 = vpop.xlane.xlu1 %206 }
 0x767   :  { %1385 = vpow2.f32 %v720_v29 }
 0x768   :  { %1387 = vlog2.f32 %v207_v51 }
 0x76a   :  { %v379_v52 = vpop.xlane.xlu1 %378 }
 0x76b   :  { %1389 = vlog2.f32 %v379_v52 }
 0x76e   :  { %v551_v53 = vpop.xlane.xlu1 %550 }
 0x76f   :  { %1391 = vlog2.f32 %v551_v53 }
 0x771   :  { %v1386_v54 = vpop.eup %1385 }
 0x772   :  { %v1388_v55 = vpop.eup %1387  ;;  %722 = vadd.xlane.f32.xlu1 %v1386_v54 }
 0x773   :  { %v209_v56 = vmul.f32 0.6931472, %v1388_v55 }
 0x775   :  { %v1390_v57 = vpop.eup %1389  ;;  %v210_v58 = vsub.f32 %v203_v28, %v209_v56 }
 0x776   :  { %v381_v59 = vmul.f32 0.6931472, %v1390_v57 }
 0x777   :  { %739 = vst [vmem:[%s1723_s4 + $0x8] sm:$0xff] %v210_v58 }
 0x778   :  { %v382_v60 = vsub.f32 %v375_v32, %v381_v59 }
 0x779   :  { %v1392_v61 = vpop.eup %1391 }
 0x77a   :  { %743 = vst [vmem:[%s1723_s4 + $0x18] sm:$0xff] %v382_v60  ;;  %v553_v62 = vmul.f32 0.6931472, %v1392_v61 }
 0x77c   :  { %v554_v63 = vsub.f32 %v547_v35, %v553_v62 }
 0x77e   :  { %747 = vst [vmem:[%s1723_s4 + $0x28] sm:$0xff] %v554_v63 }
 0x7ff   :  { %v723_v0 = vpop.xlane.xlu1 %722 }
 0x800   :  { %1393 = vlog2.f32 %v723_v0 }
 0x80a   :  { %v1394_v1 = vpop.eup %1393 }
 0x80b   :  { %v725_v2 = vmul.f32 0.6931472, %v1394_v1 }
 0x80d   :  { %v726_v3 = vsub.f32 %v719_v50, %v725_v2 }
 0x80f   :  { %751 = vst [vmem:[%s1723_s4 + $0x38] sm:$0xff] %v726_v3 }

</bundles_post_ra>
